<compile_context>
chip_gen: v6e
topology: v6e:2x2x1
jax: 0.10.0
libtpu: 0.0.40
codegen_flags: <defaults>
</compile_context>

<pallas_src>
import functools

import jax
import jax.numpy as jnp
from jax.experimental import pallas as pl
from jax.experimental.pallas import tpu as pltpu

_EPS = 1e-6                               # torch pairwise_distance default eps
_VMEM_BUDGET_BYTES = 16 * 1024 * 1024     # DMA buffers + f32 intermediates / step
_VMEM_LIMIT_BYTES = 48 * 1024 * 1024      # > 32 MiB scoped default, < v7x 64 MiB
_MAX_BLOCK_ROWS = 1024                    # past the measured HBM-roofline plateau
_N_PARTIALS = 2                           # leading "parallel" axis (v7x megacore)


def _cdiv(a, b):
    return -(-a // b)


def _triplet_loss_kernel(a_ref, p_ref, n_ref, o_ref, *, k, d, margin):
    """One (tb, k*d) tile: k packed samples per row, d features each."""
    i = pl.program_id(1)

    @pl.when(i == 0)
    def _init():
        o_ref[...] = jnp.zeros_like(o_ref)

    # Upcast to f32 for the distance math (inputs may be bf16 in HBM).
    a = a_ref[...].astype(jnp.float32)
    p = p_ref[...].astype(jnp.float32)
    n = n_ref[...].astype(jnp.float32)

    # PyTorch pairwise_distance adds eps to the difference before the norm.
    dp = a - p + jnp.float32(_EPS)
    dn = a - n + jnp.float32(_EPS)
    sq_p = dp * dp
    sq_n = dn * dn

    # Statically unrolled segmented reduction over the k packed samples/row.
    tile_sum = jnp.float32(0.0)
    for g in range(k):
        sl = slice(g * d, (g + 1) * d)
        sap = jnp.sum(sq_p[:, sl], axis=-1, keepdims=True)        # (tb, 1)
        san = jnp.sum(sq_n[:, sl], axis=-1, keepdims=True)        # (tb, 1)
        per = jnp.maximum(jnp.sqrt(sap) - jnp.sqrt(san) + jnp.float32(margin),
                          0.0)
        tile_sum = tile_sum + jnp.sum(per)

    # Output block is grid-resident across the (arbitrary) batch axis.
    o_ref[...] = o_ref[...] + tile_sum


def triplet_margin_loss(anchor, positive, negative, margin=1.0, block_rows=None):
    """anchor/positive/negative: (B, D) arrays. Returns scalar f32 loss."""
    assert anchor.shape == positive.shape == negative.shape
    assert anchor.ndim == 2
    B, D = anchor.shape
    assert B > 0 and D > 0
    itemsize = jnp.dtype(anchor.dtype).itemsize
    sub = max(8, 32 // itemsize)          # sublane multiple: 8 f32 / 16 bf16 / 32 i8

    # Lane-dense packing for narrow feature dims: fold k samples per row so a
    # vreg row carries up to 128 lanes of real data (free contiguous reshape).
    k = max(1, min(128 // D, 16)) if D < 128 else 1
    if k > 1:
        pad_b = (-B) % k
        if pad_b:
            rp = ((0, pad_b), (0, 0))
            anchor = jnp.pad(anchor, rp)
            positive = jnp.pad(positive, rp)
            negative = jnp.pad(negative, rp)
        rows = (B + pad_b) // k
        dk = k * D
        anchor = anchor.reshape(rows, dk)
        positive = positive.reshape(rows, dk)
        negative = negative.reshape(rows, dk)
    else:
        rows, dk = B, D

    # Batch tile from a VMEM budget that covers the 3 double-buffered input
    # tiles plus live f32 intermediates (safe on v7x's 64 MiB/TC).
    if block_rows is None:
        per_row_bytes = 3 * 2 * dk * itemsize + 6 * dk * 4
        block_rows = _VMEM_BUDGET_BYTES // per_row_bytes
    block_rows = max(sub, min(int(block_rows), _MAX_BLOCK_ROWS))
    block_rows = (block_rows // sub) * sub
    rows_aligned = _cdiv(rows, sub) * sub
    tb = min(block_rows, rows_aligned)

    nblocks = _cdiv(rows, tb)
    n_par = _N_PARTIALS if nblocks >= _N_PARTIALS else 1
    steps = _cdiv(nblocks, n_par)
    rows_pad = n_par * steps * tb
    if rows_pad != rows:
        rp = ((0, rows_pad - rows), (0, 0))
        anchor = jnp.pad(anchor, rp)
        positive = jnp.pad(positive, rp)
        negative = jnp.pad(negative, rp)

    kernel = functools.partial(_triplet_loss_kernel, k=k, d=D,
                               margin=float(margin))
    in_spec = pl.BlockSpec((tb, dk), lambda c, i: (c * steps + i, 0))

    out = pl.pallas_call(
        kernel,
        out_shape=jax.ShapeDtypeStruct((n_par, 8, 128), jnp.float32),
        grid=(n_par, steps),
        in_specs=[in_spec, in_spec, in_spec],
        out_specs=pl.BlockSpec((1, 8, 128), lambda c, i: (c, 0, 0)),
        compiler_params=pltpu.CompilerParams(
            dimension_semantics=("parallel", "arbitrary"),
            vmem_limit_bytes=_VMEM_LIMIT_BYTES,
        ),
    )(anchor, positive, negative)

    # Padded zero samples contribute exactly max(margin, 0) each (the eps terms
    # cancel identically in d(a,p) and d(a,n)); correct for them once here.
    total = jnp.sum(out[:, 0, 0])
    n_pad_samples = rows_pad * k - B
    correction = jnp.float32(n_pad_samples * max(float(margin), 0.0))
    return (total - correction) / jnp.float32(B)


def _reference(anchor, positive, negative, margin=1.0):
    # Pure-JAX reference mirroring PyTorch semantics (f32 math).
    a = anchor.astype(jnp.float32)
    p = positive.astype(jnp.float32)
    n = negative.astype(jnp.float32)
    dap = jnp.sqrt(jnp.sum((a - p + _EPS) ** 2, axis=-1))
    dan = jnp.sqrt(jnp.sum((a - n + _EPS) ** 2, axis=-1))
    return jnp.mean(jnp.maximum(dap - dan + margin, 0.0))


if __name__ == "__main__":
    base_key = jax.random.PRNGKey(0)

    def _check(B, D, dtype, **kw):
        ks = jax.random.split(jax.random.fold_in(base_key, B * 1000 + D), 3)
        a = jax.random.normal(ks[0], (B, D), dtype=jnp.float32).astype(dtype)
        p = jax.random.normal(ks[1], (B, D), dtype=jnp.float32).astype(dtype)
        n = jax.random.normal(ks[2], (B, D), dtype=jnp.float32).astype(dtype)
        got = jax.block_until_ready(triplet_margin_loss(a, p, n, **kw))
        want = jax.block_until_ready(_reference(a, p, n, kw.get("margin", 1.0)))
        assert jnp.allclose(got, want, rtol=1e-4, atol=1e-5), (B, D, got, want)

    # 1) Toy embedding shape (lane-dense packing path, single grid step).
    _check(8, 32, jnp.float32)
    # 2) Non-divisible batch, multi-step grid + two parallel partials, D >= 128.
    _check(200, 128, jnp.float32, block_rows=64)
    # 3) Packing path with multiple blocks and padded packed rows/samples.
    _check(100, 32, jnp.float32, block_rows=8)
    # 4) bf16 streaming (half the HBM bytes) with f32 in-kernel math.
    _check(64, 256, jnp.bfloat16)

    print("KERNEL_OK")
</pallas_src>

<mosaic_0001>
module attributes {stable_mosaic.version = 11 : i64} {
  func.func @_triplet_loss_kernel(%arg0: i32, %arg1: i32, %arg2: memref<8x128xf32, #tpu.memory_space<vmem>>, %arg3: memref<8x128xf32, #tpu.memory_space<vmem>>, %arg4: memref<8x128xf32, #tpu.memory_space<vmem>>, %arg5: memref<1x8x128xf32, #tpu.memory_space<vmem>>) attributes {dimension_semantics = [#tpu.dimension_semantics<parallel>, #tpu.dimension_semantics<arbitrary>], iteration_bounds = array<i64: 1, 1>, scalar_prefetch = 0 : i64, scratch_operands = 0 : i64, tpu.core_type = #tpu.core_type<tc>, window_params = [{transform_indices = @transform_0, window_bounds = array<i64: 8, 128>}, {transform_indices = @transform_1, window_bounds = array<i64: 8, 128>}, {transform_indices = @transform_2, window_bounds = array<i64: 8, 128>}, {transform_indices = @transform_3, window_bounds = array<i64: 1, 8, 128>}]} {
    %c0_i32 = arith.constant 0 : i32
    %0 = arith.cmpi eq, %arg1, %c0_i32 : i32
    %1 = arith.extui %0 : i1 to i32
    %c0_i32_0 = arith.constant 0 : i32
    %2 = arith.cmpi ne, %1, %c0_i32_0 : i32
    scf.if %2 {
      %cst_34 = arith.constant 0.000000e+00 : f32
      %90 = vector.broadcast %cst_34 : f32 to vector<1x8x128xf32>
      %c0_35 = arith.constant 0 : index
      %c0_36 = arith.constant 0 : index
      %c0_37 = arith.constant 0 : index
      %91 = vector.load %arg5[%c0_35, %c0_36, %c0_37] : memref<1x8x128xf32, #tpu.memory_space<vmem>>, vector<1x8x128xf32>
      tpu.vector_store %arg5[%c0_35, %c0_36, %c0_37], %90 {strides = array<i32>} : memref<1x8x128xf32, #tpu.memory_space<vmem>>, vector<1x8x128xf32>,
    } else {
    }
    %c0 = arith.constant 0 : index
    %c0_1 = arith.constant 0 : index
    %3 = vector.load %arg2[%c0, %c0_1] : memref<8x128xf32, #tpu.memory_space<vmem>>, vector<8x128xf32>
    %c0_2 = arith.constant 0 : index
    %c0_3 = arith.constant 0 : index
    %4 = vector.load %arg3[%c0_2, %c0_3] : memref<8x128xf32, #tpu.memory_space<vmem>>, vector<8x128xf32>
    %c0_4 = arith.constant 0 : index
    %c0_5 = arith.constant 0 : index
    %5 = vector.load %arg4[%c0_4, %c0_5] : memref<8x128xf32, #tpu.memory_space<vmem>>, vector<8x128xf32>
    %6 = arith.subf %3, %4 : vector<8x128xf32>
    %cst = arith.constant 9.99999997E-7 : f32
    %7 = vector.broadcast %cst : f32 to vector<8x128xf32>
    %8 = arith.addf %6, %7 : vector<8x128xf32>
    %9 = arith.subf %3, %5 : vector<8x128xf32>
    %cst_6 = arith.constant 9.99999997E-7 : f32
    %10 = vector.broadcast %cst_6 : f32 to vector<8x128xf32>
    %11 = arith.addf %9, %10 : vector<8x128xf32>
    %12 = arith.mulf %8, %8 : vector<8x128xf32>
    %13 = arith.mulf %11, %11 : vector<8x128xf32>
    %14 = vector.extract_strided_slice %12 {offsets = [0, 0], sizes = [8, 32], strides = [1, 1]} : vector<8x128xf32> to vector<8x32xf32>
    %cst_7 = arith.constant dense<0.000000e+00> : vector<8xf32>
    %15 = vector.multi_reduction <add>, %14, %cst_7 [1] : vector<8x32xf32> to vector<8xf32>
    %16 = vector.shape_cast %15 : vector<8xf32> to vector<8x1xf32>
    %17 = vector.extract_strided_slice %13 {offsets = [0, 0], sizes = [8, 32], strides = [1, 1]} : vector<8x128xf32> to vector<8x32xf32>
    %cst_8 = arith.constant dense<0.000000e+00> : vector<8xf32>
    %18 = vector.multi_reduction <add>, %17, %cst_8 [1] : vector<8x32xf32> to vector<8xf32>
    %19 = vector.shape_cast %18 : vector<8xf32> to vector<8x1xf32>
    %20 = math.sqrt %16 : vector<8x1xf32>
    %21 = math.sqrt %19 : vector<8x1xf32>
    %22 = arith.subf %20, %21 : vector<8x1xf32>
    %cst_9 = arith.constant 1.000000e+00 : f32
    %23 = vector.broadcast %cst_9 : f32 to vector<8x1xf32>
    %24 = arith.addf %22, %23 : vector<8x1xf32>
    %cst_10 = arith.constant 0.000000e+00 : f32
    %25 = vector.broadcast %cst_10 : f32 to vector<8x1xf32>
    %26 = arith.maximumf %24, %25 : vector<8x1xf32>
    %27 = vector.shape_cast %26 : vector<8x1xf32> to vector<1x8x1xf32>
    %cst_11 = arith.constant dense<0.000000e+00> : vector<1xf32>
    %28 = vector.multi_reduction <add>, %27, %cst_11 [1, 2] : vector<1x8x1xf32> to vector<1xf32>
    %29 = vector.shape_cast %28 : vector<1xf32> to vector<1x1x1xf32>
    %30 = vector.extract %29[0, 0, 0] : f32 from vector<1x1x1xf32>
    %cst_12 = arith.constant 0.000000e+00 : f32
    %31 = arith.addf %cst_12, %30 : f32
    %32 = vector.extract_strided_slice %12 {offsets = [0, 32], sizes = [8, 32], strides = [1, 1]} : vector<8x128xf32> to vector<8x32xf32>
    %cst_13 = arith.constant dense<0.000000e+00> : vector<8xf32>
    %33 = vector.multi_reduction <add>, %32, %cst_13 [1] : vector<8x32xf32> to vector<8xf32>
    %34 = vector.shape_cast %33 : vector<8xf32> to vector<8x1xf32>
    %35 = vector.extract_strided_slice %13 {offsets = [0, 32], sizes = [8, 32], strides = [1, 1]} : vector<8x128xf32> to vector<8x32xf32>
    %cst_14 = arith.constant dense<0.000000e+00> : vector<8xf32>
    %36 = vector.multi_reduction <add>, %35, %cst_14 [1] : vector<8x32xf32> to vector<8xf32>
    %37 = vector.shape_cast %36 : vector<8xf32> to vector<8x1xf32>
    %38 = math.sqrt %34 : vector<8x1xf32>
    %39 = math.sqrt %37 : vector<8x1xf32>
    %40 = arith.subf %38, %39 : vector<8x1xf32>
    %cst_15 = arith.constant 1.000000e+00 : f32
    %41 = vector.broadcast %cst_15 : f32 to vector<8x1xf32>
    %42 = arith.addf %40, %41 : vector<8x1xf32>
    %cst_16 = arith.constant 0.000000e+00 : f32
    %43 = vector.broadcast %cst_16 : f32 to vector<8x1xf32>
    %44 = arith.maximumf %42, %43 : vector<8x1xf32>
    %45 = vector.shape_cast %44 : vector<8x1xf32> to vector<1x8x1xf32>
    %cst_17 = arith.constant dense<0.000000e+00> : vector<1xf32>
    %46 = vector.multi_reduction <add>, %45, %cst_17 [1, 2] : vector<1x8x1xf32> to vector<1xf32>
    %47 = vector.shape_cast %46 : vector<1xf32> to vector<1x1x1xf32>
    %48 = vector.extract %47[0, 0, 0] : f32 from vector<1x1x1xf32>
    %49 = arith.addf %31, %48 : f32
    %50 = vector.extract_strided_slice %12 {offsets = [0, 64], sizes = [8, 32], strides = [1, 1]} : vector<8x128xf32> to vector<8x32xf32>
    %cst_18 = arith.constant dense<0.000000e+00> : vector<8xf32>
    %51 = vector.multi_reduction <add>, %50, %cst_18 [1] : vector<8x32xf32> to vector<8xf32>
    %52 = vector.shape_cast %51 : vector<8xf32> to vector<8x1xf32>
    %53 = vector.extract_strided_slice %13 {offsets = [0, 64], sizes = [8, 32], strides = [1, 1]} : vector<8x128xf32> to vector<8x32xf32>
    %cst_19 = arith.constant dense<0.000000e+00> : vector<8xf32>
    %54 = vector.multi_reduction <add>, %53, %cst_19 [1] : vector<8x32xf32> to vector<8xf32>
    %55 = vector.shape_cast %54 : vector<8xf32> to vector<8x1xf32>
    %56 = math.sqrt %52 : vector<8x1xf32>
    %57 = math.sqrt %55 : vector<8x1xf32>
    %58 = arith.subf %56, %57 : vector<8x1xf32>
    %cst_20 = arith.constant 1.000000e+00 : f32
    %59 = vector.broadcast %cst_20 : f32 to vector<8x1xf32>
    %60 = arith.addf %58, %59 : vector<8x1xf32>
    %cst_21 = arith.constant 0.000000e+00 : f32
    %61 = vector.broadcast %cst_21 : f32 to vector<8x1xf32>
    %62 = arith.maximumf %60, %61 : vector<8x1xf32>
    %63 = vector.shape_cast %62 : vector<8x1xf32> to vector<1x8x1xf32>
    %cst_22 = arith.constant dense<0.000000e+00> : vector<1xf32>
    %64 = vector.multi_reduction <add>, %63, %cst_22 [1, 2] : vector<1x8x1xf32> to vector<1xf32>
    %65 = vector.shape_cast %64 : vector<1xf32> to vector<1x1x1xf32>
    %66 = vector.extract %65[0, 0, 0] : f32 from vector<1x1x1xf32>
    %67 = arith.addf %49, %66 : f32
    %68 = vector.extract_strided_slice %12 {offsets = [0, 96], sizes = [8, 32], strides = [1, 1]} : vector<8x128xf32> to vector<8x32xf32>
    %cst_23 = arith.constant dense<0.000000e+00> : vector<8xf32>
    %69 = vector.multi_reduction <add>, %68, %cst_23 [1] : vector<8x32xf32> to vector<8xf32>
    %70 = vector.shape_cast %69 : vector<8xf32> to vector<8x1xf32>
    %71 = vector.extract_strided_slice %13 {offsets = [0, 96], sizes = [8, 32], strides = [1, 1]} : vector<8x128xf32> to vector<8x32xf32>
    %cst_24 = arith.constant dense<0.000000e+00> : vector<8xf32>
    %72 = vector.multi_reduction <add>, %71, %cst_24 [1] : vector<8x32xf32> to vector<8xf32>
    %73 = vector.shape_cast %72 : vector<8xf32> to vector<8x1xf32>
    %74 = math.sqrt %70 : vector<8x1xf32>
    %75 = math.sqrt %73 : vector<8x1xf32>
    %76 = arith.subf %74, %75 : vector<8x1xf32>
    %cst_25 = arith.constant 1.000000e+00 : f32
    %77 = vector.broadcast %cst_25 : f32 to vector<8x1xf32>
    %78 = arith.addf %76, %77 : vector<8x1xf32>
    %cst_26 = arith.constant 0.000000e+00 : f32
    %79 = vector.broadcast %cst_26 : f32 to vector<8x1xf32>
    %80 = arith.maximumf %78, %79 : vector<8x1xf32>
    %81 = vector.shape_cast %80 : vector<8x1xf32> to vector<1x8x1xf32>
    %cst_27 = arith.constant dense<0.000000e+00> : vector<1xf32>
    %82 = vector.multi_reduction <add>, %81, %cst_27 [1, 2] : vector<1x8x1xf32> to vector<1xf32>
    %83 = vector.shape_cast %82 : vector<1xf32> to vector<1x1x1xf32>
    %84 = vector.extract %83[0, 0, 0] : f32 from vector<1x1x1xf32>
    %85 = arith.addf %67, %84 : f32
    %c0_28 = arith.constant 0 : index
    %c0_29 = arith.constant 0 : index
    %c0_30 = arith.constant 0 : index
    %86 = vector.load %arg5[%c0_28, %c0_29, %c0_30] : memref<1x8x128xf32, #tpu.memory_space<vmem>>, vector<1x8x128xf32>
    %87 = vector.broadcast %85 : f32 to vector<1x8x128xf32>
    %88 = arith.addf %86, %87 : vector<1x8x128xf32>
    %c0_31 = arith.constant 0 : index
    %c0_32 = arith.constant 0 : index
    %c0_33 = arith.constant 0 : index
    %89 = vector.load %arg5[%c0_31, %c0_32, %c0_33] : memref<1x8x128xf32, #tpu.memory_space<vmem>>, vector<1x8x128xf32>
    tpu.vector_store %arg5[%c0_31, %c0_32, %c0_33], %88 {strides = array<i32>} : memref<1x8x128xf32, #tpu.memory_space<vmem>>, vector<1x8x128xf32>,
    return
  }
  func.func @transform_0(%arg0: i32, %arg1: i32) -> (i32, i32) {
    %c1_i32 = arith.constant 1 : i32
    %0 = arith.muli %arg0, %c1_i32 : i32
    %1 = arith.addi %0, %arg1 : i32
    %c0_i32 = arith.constant 0 : i32
    %c0_i32_0 = arith.constant 0 : i32
    return %1, %c0_i32 : i32, i32
  }
  func.func @transform_1(%arg0: i32, %arg1: i32) -> (i32, i32) {
    %c1_i32 = arith.constant 1 : i32
    %0 = arith.muli %arg0, %c1_i32 : i32
    %1 = arith.addi %0, %arg1 : i32
    %c0_i32 = arith.constant 0 : i32
    %c0_i32_0 = arith.constant 0 : i32
    return %1, %c0_i32 : i32, i32
  }
  func.func @transform_2(%arg0: i32, %arg1: i32) -> (i32, i32) {
    %c1_i32 = arith.constant 1 : i32
    %0 = arith.muli %arg0, %c1_i32 : i32
    %1 = arith.addi %0, %arg1 : i32
    %c0_i32 = arith.constant 0 : i32
    %c0_i32_0 = arith.constant 0 : i32
    return %1, %c0_i32 : i32, i32
  }
  func.func @transform_3(%arg0: i32, %arg1: i32) -> (i32, i32, i32) {
    %c0_i32 = arith.constant 0 : i32
    %c0_i32_0 = arith.constant 0 : i32
    %c0_i32_1 = arith.constant 0 : i32
    return %arg0, %c0_i32, %c0_i32_0 : i32, i32, i32
  }
}

</mosaic_0001>

<bundles_post_ra>
// kernel: tpu_custom_call.1
= control target key start
LH: loop header
LB: loop body
LE: loop exit
PB: predicated region body
PF: predicated region fallthrough
CT: control target
= control target key end

     0   :  { %8 = vsyncpa [#allocation3], 0  ;;  %s423_s0 = inlined_call_operand.hbm [shape: f32[8,128], index: 0, kind: input, shape index: {}]   ;;  %s424_s1 = inlined_call_operand.hbm [shape: f32[8,128], index: 1, kind: input, shape index: {}]   ;;  %s425_s2 = inlined_call_operand.hbm [shape: f32[8,128], index: 2, kind: input, shape index: {}]   ;;  %s426_s3 = inlined_call_operand.hbm [shape: f32[1,8,128], index: 3, kind: output, shape index: {}]  }
   0x1   :  { %9 = vsyncpa [#allocation6], 0 }
   0x2   :  { %10 = vsyncpa [#allocation4], 0  ;;  %s372_s12 = smov [#allocation5]   ;;  %s373_s14 = smov [#allocation2]  }
   0x3   :  { %s33_s13 = sshll.u32 %s372_s12, 4  ;;  %s20_s15 = sshll.u32 %s373_s14, 4  ;;  %s34_s13 = int_to_ptr.vmem [resolvable:$true] %s33_s13  ;;  %s21_s15 = int_to_ptr.vmem [resolvable:$true] %s20_s15 }
   0x4   :  { %s294_s16 = scalar_lea.vmem %s34_s13, 128  ;;  %p299_p1 = scmp.lt.s32.totalorder %s34_s13, %s34_s13 }
   0x5   :  { %p295_p0 = scmp.ne.s32.totalorder %s34_s13, %s294_s16  ;;  %p300_p2 = scmp.lt.s32.totalorder %s294_s16, %s294_s16 }
   0x7   :  { %p301_p3 = por %p300_p2, %p299_p1 }
   0x9   :  { %p302_p4 = pnand %p301_p3, %p295_p0 }
   0xb   :  { %305 = shalt.err (!%p302_p4)
}
   0xc   :  { %36 = dma.hbm_to_vmem [thread:$0]  %s424_s1, 128, %s34_s13, [#allocation6]  }
   0xd   :  { %s314_s19 = scalar_lea.vmem %s21_s15, 128  ;;  %p319_p6 = scmp.lt.s32.totalorder %s21_s15, %s21_s15 }
   0xe   :  { %p315_p5 = scmp.ne.s32.totalorder %s21_s15, %s314_s19  ;;  %p320_p7 = scmp.lt.s32.totalorder %s314_s19, %s314_s19 }
  0x10   :  { %p321_p8 = por %p320_p7, %p319_p6 }
  0x12   :  { %p322_p9 = pnand %p321_p8, %p315_p5 }
  0x14   :  { %325 = shalt.err (!%p322_p9)
}
  0x15   :  { %23 = dma.hbm_to_vmem [thread:$0]  %s423_s0, 128, %s21_s15, [#allocation3]  }
  0x16   :  { %s374_s22 = smov [#allocation7]  }
  0x17   :  { %s46_s23 = sshll.u32 %s374_s22, 4  ;;  %s47_s23 = int_to_ptr.vmem [resolvable:$true] %s46_s23 }
  0x18   :  { %s334_s24 = scalar_lea.vmem %s47_s23, 128  ;;  %p339_p11 = scmp.lt.s32.totalorder %s47_s23, %s47_s23 }
  0x19   :  { %p335_p10 = scmp.ne.s32.totalorder %s47_s23, %s334_s24  ;;  %p340_p12 = scmp.lt.s32.totalorder %s334_s24, %s334_s24 }
  0x1b   :  { %p341_p13 = por %p340_p12, %p339_p11 }
  0x1d   :  { %p342_p0 = pnand %p341_p13, %p335_p10 }
  0x1f   :  { %345 = shalt.err (!%p342_p0)
}
  0x20   :  { %49 = dma.hbm_to_vmem [thread:$0]  %s425_s2, 128, %s47_s23, [#allocation6]  }
  0x21   :  { %366 = dma.done.wait [#allocation3], 128  }
  0x22   :  { %367 = vsyncadd [#allocation3], 4294967168 }
  0x23   :  { %368 = dma.done.wait [#allocation6], 256  }
  0x24   :  { %369 = vsyncadd [#allocation6], 4294967040  ;;  %v67_v0 = vld [vmem:[#allocation2] sm:$0xff]  ;;  %v68_v1 = vld [vmem:[#allocation5] sm:$0xff]  ;;  %s375_s0 = smov 64   ;;  %s376_s26 = smov 96  }
  0x25   :  { %v69_v2 = vld [vmem:[#allocation7] sm:$0xff]  ;;  %v70_v3 = vsub.f32 %v67_v0, %v68_v1  ;;  %s377_s2 = smov 32   ;;  %vm76_vm0 = vcmask 261120   ;;  %vm100_vm5 = vcmask 7168   ;;  %s378_s7 = smov [#allocation8]  }
  0x26   :  { %v72_v4 = vsub.f32 %v67_v0, %v69_v2  ;;  %s244_s8 = sshll.u32 %s378_s7, 4  ;;  %s245_s8 = int_to_ptr.vmem [resolvable:$true] %s244_s8 }
  0x27   :  { %v71_v5 = vadd.f32 1e-06, %v70_v3  ;;  %s346_s9 = scalar_lea.vmem %s245_s8, 128  ;;  %p351_p2 = scmp.lt.s32.totalorder %s245_s8, %s245_s8 }
  0x28   :  { %v73_v6 = vadd.f32 1e-06, %v72_v4  ;;  %p347_p1 = scmp.ne.s32.totalorder %s245_s8, %s346_s9  ;;  %p352_p3 = scmp.lt.s32.totalorder %s346_s9, %s346_s9 }
  0x29   :  { %v74_v7 = vmul.f32 %v71_v5, %v71_v5 }
  0x2a   :  { %v75_v8 = vmul.f32 %v73_v6, %v73_v6  ;;  %p353_p4 = por %p352_p3, %p351_p2 }
  0x2b   :  { %154 = vrot.lane.b32.xlu1 %v74_v7, %s375_s0  ;;  %113 = vrot.lane.b32.xlu0 %v74_v7, %s376_s26  ;;  %v77_v9 = vsel %vm76_vm0, %v74_v7, 0.0 }
  0x2c   :  { %v80_v10 = vsel %vm76_vm0, %v75_v8, 0.0  ;;  %p354_p5 = pnand %p353_p4, %p347_p1 }
  0x2f   :  { %120 = vrot.lane.b32.xlu0 %v75_v8, %s376_s26  ;;  %160 = vrot.lane.b32.xlu1 %v75_v8, %s375_s0 }
  0x33   :  { %194 = vrot.lane.b32.xlu0 %v74_v7, %s377_s2  ;;  %200 = vrot.lane.b32.xlu1 %v75_v8, %s377_s2 }
  0x52   :  { %78 = vadd.xlane.f32.xlu0 %v77_v9 }
  0x57   :  { %81 = vadd.xlane.f32.xlu1 %v80_v10 }
  0x9d   :  { %v155_v11 = vpop.permute.xlu1 %154  ;;  %v114_v12 = vpop.permute.xlu0 %113 }
  0x9e   :  { %v157_v13 = vsel %vm76_vm0, %v155_v11, 0.0  ;;  %v116_v14 = vsel %vm76_vm0, %v114_v12, 0.0 }
  0x9f   :  { %158 = vadd.xlane.f32.xlu1 %v157_v13  ;;  %117 = vadd.xlane.f32.xlu0 %v116_v14 }
  0xa1   :  { %v121_v15 = vpop.permute.xlu0 %120  ;;  %v161_v16 = vpop.permute.xlu1 %160 }
  0xa2   :  { %v123_v17 = vsel %vm76_vm0, %v121_v15, 0.0  ;;  %v163_v18 = vsel %vm76_vm0, %v161_v16, 0.0 }
  0xa3   :  { %124 = vadd.xlane.f32.xlu0 %v123_v17 }
  0xa5   :  { %v195_v19 = vpop.permute.xlu0 %194  ;;  %v201_v20 = vpop.permute.xlu1 %200 }
  0xa6   :  { %v197_v21 = vsel %vm76_vm0, %v195_v19, 0.0  ;;  %v203_v22 = vsel %vm76_vm0, %v201_v20, 0.0 }
  0xa7   :  { %198 = vadd.xlane.f32.xlu1 %v197_v21  ;;  %164 = vadd.xlane.f32.xlu0 %v163_v18 }
  0xab   :  { %204 = vadd.xlane.f32.xlu0 %v203_v22 }
  0xdb   :  { %v79_v23 = vpop.xlane.xlu0 %78 }
  0xdc   :  { %270 = vrsqrt.f32 %v79_v23  ;;  %vm85_vm1 = vcmp.eq.f32.partialorder %v79_v23, inf  ;;  %v88_v27 = vand.u32 2147483648, %v79_v23  ;;  %vm87_vm2 = vcmp.eq.f32.partialorder %v79_v23, 0.0 }
  0xe0   :  { %v82_v24 = vpop.xlane.xlu1 %81 }
  0xe1   :  { %272 = vrsqrt.f32 %v82_v24  ;;  %vm92_vm3 = vcmp.eq.f32.partialorder %v82_v24, inf  ;;  %v95_v30 = vand.u32 2147483648, %v82_v24  ;;  %vm94_vm4 = vcmp.eq.f32.partialorder %v82_v24, 0.0 }
  0xe9   :  { %v271_v25 = vpop.eup %270 }
  0xea   :  { %v84_v26 = vmul.f32 %v271_v25, %v79_v23 }
  0xec   :  { %v86_v28 = vsel %vm85_vm1, %v79_v23, %v84_v26 }
  0xed   :  { %v89_v32 = vsel %vm87_vm2, %v88_v27, %v86_v28 }
  0xee   :  { %v273_v29 = vpop.eup %272 }
  0xef   :  { %v91_v31 = vmul.f32 %v273_v29, %v82_v24 }
  0xf1   :  { %v93_v33 = vsel %vm92_vm3, %v82_v24, %v91_v31 }
  0xf2   :  { %v96_v34 = vsel %vm94_vm4, %v95_v30, %v93_v33 }
  0xf3   :  { %v97_v35 = vsub.f32 %v89_v32, %v96_v34 }
  0xf5   :  { %v98_v36 = vadd.f32 1.0, %v97_v35 }
  0xf7   :  { %v99_v37 = vmax.f32 %v98_v36, 0.0 }
  0xf9   :  { %v101_v38 = vsel %vm100_vm5, %v99_v37, 0.0 }
  0xfa   :  { %102 = vadd.xlane.f32.xlu1 %v101_v38 }
 0x128   :  { %v159_v39 = vpop.xlane.xlu1 %158  ;;  %v118_v40 = vpop.xlane.xlu0 %117 }
 0x129   :  { %274 = vrsqrt.f32 %v118_v40  ;;  %vm128_vm6 = vcmp.eq.f32.partialorder %v118_v40, inf  ;;  %v131_v52 = vand.u32 2147483648, %v118_v40  ;;  %vm130_vm8 = vcmp.eq.f32.partialorder %v118_v40, 0.0 }
 0x12a   :  { %276 = vrsqrt.f32 %v159_v39  ;;  %vm168_vm10 = vcmp.eq.f32.partialorder %v159_v39, inf  ;;  %v171_v62 = vand.u32 2147483648, %v159_v39  ;;  %vm170_vm11 = vcmp.eq.f32.partialorder %v159_v39, 0.0 }
 0x12c   :  { %v125_v41 = vpop.xlane.xlu0 %124 }
 0x12d   :  { %278 = vrsqrt.f32 %v125_v41  ;;  %vm135_vm7 = vcmp.eq.f32.partialorder %v125_v41, inf  ;;  %v138_v53 = vand.u32 2147483648, %v125_v41  ;;  %vm137_vm9 = vcmp.eq.f32.partialorder %v125_v41, 0.0 }
 0x130   :  { %v199_v42 = vpop.xlane.xlu1 %198  ;;  %v165_v43 = vpop.xlane.xlu0 %164 }
 0x131   :  { %280 = vrsqrt.f32 %v199_v42  ;;  %vm175_vm12 = vcmp.eq.f32.partialorder %v165_v43, inf  ;;  %v178_v1 = vand.u32 2147483648, %v165_v43  ;;  %vm177_vm13 = vcmp.eq.f32.partialorder %v165_v43, 0.0 }
 0x132   :  { %282 = vrsqrt.f32 %v165_v43  ;;  %vm208_vm14 = vcmp.eq.f32.partialorder %v199_v42, inf  ;;  %v211_v10 = vand.u32 2147483648, %v199_v42  ;;  %vm210_vm0 = vcmp.eq.f32.partialorder %v199_v42, 0.0 }
 0x134   :  { %v205_v44 = vpop.xlane.xlu0 %204 }
 0x135   :  { %284 = vrsqrt.f32 %v205_v44  ;;  %vm215_vm15 = vcmp.eq.f32.partialorder %v205_v44, inf  ;;  %v218_v11 = vand.u32 2147483648, %v205_v44  ;;  %vm217_vm1 = vcmp.eq.f32.partialorder %v205_v44, 0.0 }
 0x136   :  { %v275_v45 = vpop.eup %274 }
 0x137   :  { %v277_v46 = vpop.eup %276  ;;  %v127_v47 = vmul.f32 %v275_v45, %v118_v40 }
 0x138   :  { %v167_v51 = vmul.f32 %v277_v46, %v159_v39 }
 0x139   :  { %v129_v49 = vsel %vm128_vm6, %v118_v40, %v127_v47 }
 0x13a   :  { %v279_v48 = vpop.eup %278  ;;  %v132_v56 = vsel %vm130_vm8, %v131_v52, %v129_v49  ;;  %v169_v60 = vsel %vm168_vm10, %v159_v39, %v167_v51 }
 0x13b   :  { %v134_v50 = vmul.f32 %v279_v48, %v125_v41  ;;  %v172_v3 = vsel %vm170_vm11, %v171_v62, %v169_v60 }
 0x13d   :  { %v136_v54 = vsel %vm135_vm7, %v125_v41, %v134_v50 }
 0x13e   :  { %v281_v55 = vpop.eup %280  ;;  %v139_v57 = vsel %vm137_vm9, %v138_v53, %v136_v54 }
 0x13f   :  { %v283_v58 = vpop.eup %282  ;;  %v140_v59 = vsub.f32 %v132_v56, %v139_v57  ;;  %v207_v61 = vmul.f32 %v281_v55, %v199_v42 }
 0x140   :  { %v174_v63 = vmul.f32 %v283_v58, %v165_v43 }
 0x141   :  { %v141_v0 = vadd.f32 1.0, %v140_v59  ;;  %v209_v7 = vsel %vm208_vm14, %v199_v42, %v207_v61 }
 0x142   :  { %v285_v2 = vpop.eup %284  ;;  %v176_v4 = vsel %vm175_vm12, %v165_v43, %v174_v63  ;;  %v212_v15 = vsel %vm210_vm0, %v211_v10, %v209_v7 }
 0x143   :  { %v142_v5 = vmax.f32 %v141_v0, 0.0  ;;  %v179_v6 = vsel %vm177_vm13, %v178_v1, %v176_v4  ;;  %v214_v8 = vmul.f32 %v285_v2, %v205_v44 }
 0x144   :  { %v180_v9 = vsub.f32 %v172_v3, %v179_v6 }
 0x145   :  { %v143_v12 = vsel %vm100_vm5, %v142_v5, 0.0  ;;  %v216_v13 = vsel %vm215_vm15, %v205_v44, %v214_v8 }
 0x146   :  { %144 = vadd.xlane.f32.xlu0 %v143_v12  ;;  %v181_v14 = vadd.f32 1.0, %v180_v9  ;;  %v219_v16 = vsel %vm217_vm1, %v218_v11, %v216_v13 }
 0x147   :  { %v220_v17 = vsub.f32 %v212_v15, %v219_v16 }
 0x148   :  { %v182_v18 = vmax.f32 %v181_v14, 0.0 }
 0x149   :  { %v221_v19 = vadd.f32 1.0, %v220_v17 }
 0x14a   :  { %v183_v20 = vsel %vm100_vm5, %v182_v18, 0.0 }
 0x14b   :  { %184 = vadd.xlane.f32.xlu1 %v183_v20  ;;  %v222_v21 = vmax.f32 %v221_v19, 0.0 }
 0x14d   :  { %v223_v22 = vsel %vm100_vm5, %v222_v21, 0.0 }
 0x14e   :  { %224 = vadd.xlane.f32.xlu0 %v223_v22 }
 0x183   :  { %v103_v23 = vpop.xlane.xlu1 %102 }
 0x184   :  { %v104_v24 = vrot.slane %v103_v23, 4 }
 0x186   :  { %v105_v25 = vadd.f32 %v104_v24, %v103_v23 }
 0x188   :  { %v106_v26 = vrot.slane %v105_v25, 2 }
 0x18a   :  { %v107_v27 = vadd.f32 %v106_v26, %v105_v25 }
 0x18c   :  { %v108_v28 = vrot.slane %v107_v27, 1 }
 0x18e   :  { %v109_v29 = vadd.f32 %v108_v28, %v107_v27 }
 0x190   :  { %254 = vpush %v109_v29 }
 0x1c1   :  { %s255_s27 = spop %254 }
 0x1cf   :  { %v145_v30 = vpop.xlane.xlu0 %144 }
 0x1d0   :  { %v146_v31 = vrot.slane %v145_v30, 4 }
 0x1d2   :  { %v147_v32 = vadd.f32 %v146_v31, %v145_v30 }
 0x1d4   :  { %v148_v33 = vrot.slane %v147_v32, 2  ;;  %v185_v34 = vpop.xlane.xlu1 %184 }
 0x1d5   :  { %v186_v35 = vrot.slane %v185_v34, 4 }
 0x1d6   :  { %v149_v36 = vadd.f32 %v148_v33, %v147_v32 }
 0x1d7   :  { %v187_v37 = vadd.f32 %v186_v35, %v185_v34  ;;  %v225_v38 = vpop.xlane.xlu0 %224 }
 0x1d8   :  { %v226_v39 = vrot.slane %v225_v38, 4  ;;  %v150_v40 = vrot.slane %v149_v36, 1 }
 0x1d9   :  { %v188_v41 = vrot.slane %v187_v37, 2 }
 0x1da   :  { %v227_v42 = vadd.f32 %v226_v39, %v225_v38  ;;  %v151_v43 = vadd.f32 %v150_v40, %v149_v36 }
 0x1db   :  { %v189_v44 = vadd.f32 %v188_v41, %v187_v37 }
 0x1dc   :  { %v228_v45 = vrot.slane %v227_v42, 2  ;;  %256 = vpush %v151_v43 }
 0x1dd   :  { %v190_v46 = vrot.slane %v189_v44, 1 }
 0x1de   :  { %v229_v47 = vadd.f32 %v228_v45, %v227_v42 }
 0x1df   :  { %v191_v48 = vadd.f32 %v190_v46, %v189_v44 }
 0x1e0   :  { %v230_v49 = vrot.slane %v229_v47, 1 }
 0x1e1   :  { %258 = vpush %v191_v48 }
 0x1e2   :  { %v231_v50 = vadd.f32 %v230_v49, %v229_v47 }
 0x1e4   :  { %260 = vpush %v231_v50 }
 0x20d   :  { %s257_s28 = spop %256 }
 0x20e   :  { %s153_s29 = sadd.f32 %s257_s28, %s255_s27 }
 0x212   :  { %s259_s30 = spop %258 }
 0x213   :  { %s193_s4 = sadd.f32 %s259_s30, %s153_s29 }
 0x215   :  { %s261_s5 = spop %260 }
 0x216   :  { %s233_s6 = sadd.f32 %s261_s5, %s193_s4 }
 0x218   :  { %v235_v51 = vstv %s233_s6 }
 0x219   :  { %237 = vst [vmem:[#allocation8] sm:$0xff] %v235_v51 }
 0x21a   :  { %357 = shalt.err (!%p354_p5)
}
 0x21b   :  { %247 = dma.vmem_to_hbm [thread:$0]  %s245_s8, 128, %s426_s3, [#allocation4]  }
 0x21c   :  { %370 = dma.done.wait [#allocation4], 128  }
 0x21d   :  { %371 = vsyncadd [#allocation4], 4294967168 }
 0x21e   :  { %251 = vsyncpa [#allocation3], 1 }
 0x21f   :  { %252 = vsyncpa [#allocation6], 1 }
 0x220   :  { %253 = vsyncpa [#allocation4], 1 }

</bundles_post_ra>
